<compile_context>
chip_gen: v6e
topology: v6e:2x2x1
jax: 0.10.0
libtpu: 0.0.40
codegen_flags: <defaults>
</compile_context>

<pallas_src>
import jax
import jax.numpy as jnp
from jax import lax
from jax.experimental import pallas as pl
from jax.experimental.pallas import tpu as pltpu


def _round_up(x, m):
    return ((x + m - 1) // m) * m


# Falls back to [2] (default double-buffering) if single-buffered resident
# weights (pl.Buffered(1)) are not supported by the installed jax version.
_WEIGHT_BUFFERS = [1]


# ---------------------------------------------------------------------------
# Fused forward kernel: all MLP layers + (optional toalign) + HDA head.
# ---------------------------------------------------------------------------

def make_fused_kernel(n_layers, toalign, emit_feat):
    def kernel(*refs):
        idx = 0
        x_ref = refs[idx]; idx += 1
        if toalign:
            lbl_ref = refs[idx]; idx += 1
            wdiff_ref = refs[idx]; idx += 1
        layer_refs = []
        for _ in range(n_layers):
            layer_refs.append((refs[idx], refs[idx + 1]))
            idx += 2
        whead_ref = refs[idx]; idx += 1
        head_ref = refs[idx]; idx += 1
        feat_ref = refs[idx] if emit_feat else None

        # MLP: Linear (BN scale pre-folded into W) -> +shift -> ReLU.
        # Dots run in bf16 on the MXU with f32 accumulation; elementwise
        # shift/ReLU stays in f32 (no bf16 VPU on v5e). Padded lanes stay 0:
        # padded weight cols and padded shifts are 0 and relu(0) == 0.
        h32 = x_ref[...].astype(jnp.float32)
        h = h32.astype(jnp.bfloat16)
        for (w_ref, sh_ref) in layer_refs:
            acc = jnp.dot(h, w_ref[...], preferred_element_type=jnp.float32)
            h32 = jnp.maximum(acc + sh_ref[...], 0.0)
            h = h32.astype(jnp.bfloat16)

        if toalign:
            # In-kernel label gather: one_hot(labels) @ W_diff on the MXU.
            labels = lbl_ref[...]                                    # (tm, 1) int32
            c_pad = wdiff_ref.shape[0]
            iota = lax.broadcasted_iota(jnp.int32, (labels.shape[0], c_pad), 1)
            onehot = (iota == labels).astype(jnp.bfloat16)
            wg = jnp.dot(onehot, wdiff_ref[...],
                         preferred_element_type=jnp.float32)        # (tm, Fpad)
            eng_org = jnp.sum(h32 * h32, axis=1, keepdims=True)
            fw = h32 * wg
            eng_aft = jnp.sum(fw * fw, axis=1, keepdims=True)
            # sqrt((a+eps)/(b+eps)) == sqrt(a+eps) * rsqrt(b+eps)  -> EUP ops
            scalar = jnp.sqrt(eng_org + 1e-6) * lax.rsqrt(eng_aft + 1e-6)
            h32 = fw * scalar                                        # f_pos
            h = h32.astype(jnp.bfloat16)

        if emit_feat:
            feat_ref[...] = h32.astype(feat_ref.dtype)
        # One lane-dense head matmul against [W_diff | W_sum] (zero-padded):
        #   cols [0:C)  -> logits   = f @ (W_fc - W_sum).T
        #   cols [C:2C) -> residual = f @ W_sum.T
        head_ref[...] = jnp.dot(
            h, whead_ref[...], preferred_element_type=jnp.float32
        ).astype(head_ref.dtype)

    return kernel


def fused_forward(x, layer_params, w_head, *, labels=None, w_diff=None,
                  tm, emit_feat):
    """Single pallas_call over a batch grid; weights stay VMEM-resident."""
    B, F0 = x.shape
    F_last_pad, CH_pad = w_head.shape
    toalign = labels is not None
    grid = (pl.cdiv(B, tm),)
    n_layers = len(layer_params)

    def run(weight_buffers):
        def resident(arr):
            # Constant-index weights are fetched once; single VMEM buffer.
            if weight_buffers == 1:
                return pl.BlockSpec(arr.shape, lambda i: (0, 0),
                                    pipeline_mode=pl.Buffered(1))
            return pl.BlockSpec(arr.shape, lambda i: (0, 0))

        in_specs = [pl.BlockSpec((tm, F0), lambda i: (i, 0))]
        inputs = [x]
        resident_bytes = 0
        if toalign:
            in_specs.append(pl.BlockSpec((tm, 1), lambda i: (i, 0)))
            inputs.append(labels)
            in_specs.append(resident(w_diff))
            inputs.append(w_diff)
            resident_bytes += w_diff.size * w_diff.dtype.itemsize
        for (w_t, sh) in layer_params:
            in_specs.append(resident(w_t)); inputs.append(w_t)
            in_specs.append(resident(sh)); inputs.append(sh)
            resident_bytes += (w_t.size * w_t.dtype.itemsize +
                               sh.size * sh.dtype.itemsize)
        in_specs.append(resident(w_head))
        inputs.append(w_head)
        resident_bytes += w_head.size * w_head.dtype.itemsize

        out_shape = [jax.ShapeDtypeStruct((B, CH_pad), jnp.float32)]
        out_specs = [pl.BlockSpec((tm, CH_pad), lambda i: (i, 0))]
        if emit_feat:
            out_shape.append(jax.ShapeDtypeStruct((B, F_last_pad), jnp.bfloat16))
            out_specs.append(pl.BlockSpec((tm, F_last_pad), lambda i: (i, 0)))

        # VMEM budget from actual per-step blocks: double-buffered streamed
        # tiles + resident weights + live activation temporaries.
        widths = [w.shape[1] for (w, _) in layer_params] + [F_last_pad, CH_pad]
        max_w = max(widths + [F0])
        streamed = 2 * tm * F0 * 4 + 2 * tm * CH_pad * 4
        if toalign:
            streamed += 2 * tm * 4
        if emit_feat:
            streamed += 2 * tm * F_last_pad * 2
        live = 3 * tm * max_w * 4
        need = weight_buffers * resident_bytes + streamed + live
        try:
            vmem_cap = pltpu.get_tpu_info().vmem_capacity_bytes
        except Exception:
            vmem_cap = 64 * 1024 * 1024        # conservative v7x per-core floor
        vmem_limit = int(min(max(2 * need, 32 * 1024 * 1024),
                             int(0.75 * vmem_cap)))

        return pl.pallas_call(
            make_fused_kernel(n_layers, toalign, emit_feat),
            grid=grid,
            in_specs=in_specs,
            out_specs=tuple(out_specs),
            out_shape=tuple(out_shape),
            compiler_params=pltpu.CompilerParams(
                dimension_semantics=("parallel",),   # batch axis -> both TCs on v7x
                vmem_limit_bytes=vmem_limit),
        )(*inputs)

    if _WEIGHT_BUFFERS[0] == 1:
        try:
            return run(1)
        except Exception:
            _WEIGHT_BUFFERS[0] = 2   # pl.Buffered(1) unsupported -> default pipelining
    return run(2)


# ---------------------------------------------------------------------------
# Parameter construction (deterministic, mirrors HDACls.__init__ shapes)
# ---------------------------------------------------------------------------

def kaiming_normal(key, out_f, in_f, a=0.0):
    # torch.nn.init.kaiming_normal_ (fan_in, leaky_relu gain)
    gain = jnp.sqrt(2.0 / (1.0 + a * a))
    std = gain / jnp.sqrt(jnp.asarray(in_f, jnp.float32))
    return std * jax.random.normal(key, (out_f, in_f), dtype=jnp.float32)


class HDAClsPallas:
    """Eval-stat HDACls (hda=True, bn=True, nonlinear='relu', dp=False)."""

    def __init__(self, feat_size, n_class, key, eps=1e-5):
        self.n_class = n_class
        self.fdim = feat_size[-1]
        pads = [_round_up(f, 128) for f in feat_size]
        self.flast_pad = pads[-1]
        self.ch_pad = _round_up(2 * n_class, 128)
        c_pad = _round_up(n_class, 128)

        n_layers = len(feat_size) - 1
        keys = jax.random.split(key, 6 * max(n_layers, 1) + 4)
        ki = iter(range(len(keys)))

        # ---- MLP layers: Linear + BatchNorm1d(eval) folded; scale folded into
        # the weight columns so only the shift survives as a kernel input.
        # First layer keeps its true input width (x is passed unpadded). ----
        self.layers = []
        for i in range(n_layers):
            fin, fout = feat_size[i], feat_size[i + 1]
            fin_p = fin if i == 0 else pads[i]
            fout_p = pads[i + 1]
            w = kaiming_normal(keys[next(ki)], fout, fin)                 # (out, in)
            b = 0.1 * jax.random.normal(keys[next(ki)], (fout,), jnp.float32)
            gamma = 1.0 + 0.1 * jax.random.normal(keys[next(ki)], (fout,), jnp.float32)
            beta = 0.1 * jax.random.normal(keys[next(ki)], (fout,), jnp.float32)
            run_mean = 0.1 * jax.random.normal(keys[next(ki)], (fout,), jnp.float32)
            run_var = 1.0 + 0.1 * jnp.abs(
                jax.random.normal(keys[next(ki)], (fout,), jnp.float32))
            scale = gamma / jnp.sqrt(run_var + eps)                       # BN eval fold
            shift = (b - run_mean) * scale + beta                         # bias folded in
            w_scaled = (w * scale[:, None]).T                             # (fin, fout)
            w_pad = (jnp.zeros((fin_p, fout_p), jnp.bfloat16)
                     .at[:fin, :fout].set(w_scaled.astype(jnp.bfloat16)))
            sh_pad = jnp.zeros((1, fout_p), jnp.float32).at[:, :fout].set(shift)
            self.layers.append((w_pad, sh_pad))

        # ---- Heads: fc (a=100), fc0 (a=0), fc1 (a=1), fc2 (a=2); biases zero ----
        W_fc = kaiming_normal(keys[next(ki)], n_class, self.fdim, a=100.0)
        W0 = kaiming_normal(keys[next(ki)], n_class, self.fdim, a=0.0)
        W1 = kaiming_normal(keys[next(ki)], n_class, self.fdim, a=1.0)
        W2 = kaiming_normal(keys[next(ki)], n_class, self.fdim, a=2.0)
        W_sum = W0 + W1 + W2
        W_diff = W_fc - W_sum                     # logits = f @ W_diff.T (hoisted)
        C = n_class
        w_head = jnp.zeros((self.flast_pad, self.ch_pad), jnp.bfloat16)
        w_head = w_head.at[:self.fdim, :C].set(W_diff.T.astype(jnp.bfloat16))
        w_head = w_head.at[:self.fdim, C:2 * C].set(W_sum.T.astype(jnp.bfloat16))
        self.w_head = w_head
        # Resident W_diff table for the in-kernel toalign label gather.
        self.w_diff = (jnp.zeros((c_pad, self.flast_pad), jnp.bfloat16)
                       .at[:C, :self.fdim].set(W_diff.astype(jnp.bfloat16)))

    @staticmethod
    def _pick_tm(B):
        if B <= 8:
            return 8
        # >=2 grid steps whenever possible so dimension_semantics=('parallel',)
        # can engage both TensorCores on v7x; up to 512-row tiles to amortize
        # the ~0.35us/step pipeline overhead on v5e/v6e (128 MiB VMEM).
        return min(_round_up(pl.cdiv(B, 2), 8), 512)

    def forward(self, x, toalign=False, labels=None, training=False):
        B, _ = x.shape
        tm = self._pick_tm(B)
        lbl = None
        wd = None
        if toalign:
            assert labels is not None, "labels should be assigned"
            lbl = jnp.asarray(labels, jnp.int32).reshape(B, 1)
            wd = self.w_diff
        outs = fused_forward(x.astype(jnp.float32), self.layers, self.w_head,
                             labels=lbl, w_diff=wd, tm=tm, emit_feat=training)
        head = outs[0]
        C = self.n_class
        logits = head[:, :C]
        if not training:
            return logits
        residual = head[:, C:2 * C]
        feature = outs[1][:, :self.fdim]
        return feature, logits, residual


# ---------------------------------------------------------------------------
# Pure-JAX reference (same folded bf16 params) for correctness check.
# ---------------------------------------------------------------------------

def ref_forward(model, x, toalign=False, labels=None):
    h32 = x.astype(jnp.float32)
    for (w_t, sh) in model.layers:
        acc = jnp.dot(h32.astype(jnp.bfloat16), w_t,
                      preferred_element_type=jnp.float32)
        h32 = jnp.maximum(acc + sh, 0.0)
    if toalign:
        onehot = jax.nn.one_hot(labels, model.w_diff.shape[0], dtype=jnp.bfloat16)
        wg = jnp.dot(onehot, model.w_diff, preferred_element_type=jnp.float32)
        eng_org = jnp.sum(h32 * h32, axis=1, keepdims=True)
        fw = h32 * wg
        eng_aft = jnp.sum(fw * fw, axis=1, keepdims=True)
        scalar = jnp.sqrt((eng_org + 1e-6) / (eng_aft + 1e-6))
        h32 = fw * scalar
    head = jnp.dot(h32.astype(jnp.bfloat16), model.w_head,
                   preferred_element_type=jnp.float32)
    C = model.n_class
    return h32[:, :model.fdim], head[:, :C], head[:, C:2 * C]


# ---------------------------------------------------------------------------

if __name__ == "__main__":
    key = jax.random.PRNGKey(0)
    k_param, k_x, k_lbl = jax.random.split(key, 3)

    batch = 8
    feat_size = (32, 64, 32)   # MLP: 32 -> 64 -> 32
    n_class = 8

    model = HDAClsPallas(feat_size, n_class, k_param)

    x = jax.random.normal(k_x, (batch, feat_size[0]), dtype=jnp.float32)
    labels = jax.random.randint(k_lbl, (batch,), 0, n_class)

    # eval-mode forward (toalign=False): returns logits only (no feat writeback)
    logits = model.forward(x, toalign=False, training=False)
    jax.block_until_ready(logits)

    # training-mode forward with toalign=True: returns (feature, logits, residual)
    feature, logits_pos, residual = model.forward(
        x, toalign=True, labels=labels, training=True)
    jax.block_until_ready((feature, logits_pos, residual))

    assert logits.shape == (batch, n_class)
    assert logits_pos.shape == (batch, n_class)
    assert residual.shape == (batch, n_class)
    assert feature.shape == (batch, feat_size[-1])

    # correctness check vs pure-JAX reference
    ref_feat_e, ref_logits_e, ref_resid_e = ref_forward(model, x)
    ref_feat_t, ref_logits_t, ref_resid_t = ref_forward(
        model, x, toalign=True, labels=labels)
    assert jnp.allclose(logits, ref_logits_e, rtol=1e-2, atol=1e-3)
    assert jnp.allclose(logits_pos, ref_logits_t, rtol=1e-2, atol=1e-3)
    assert jnp.allclose(residual, ref_resid_t, rtol=1e-2, atol=1e-3)
    assert jnp.allclose(feature.astype(jnp.float32), ref_feat_t,
                        rtol=1e-2, atol=5e-3)

    print("KERNEL_OK")
</pallas_src>

<mosaic_0001>
module attributes {stable_mosaic.version = 11 : i64} {
  func.func @kernel(%arg0: i32, %arg1: memref<8x32xf32, #tpu.memory_space<vmem>>, %arg2: memref<32x128xbf16, #tpu.memory_space<vmem>>, %arg3: memref<1x128xf32, #tpu.memory_space<vmem>>, %arg4: memref<128x128xbf16, #tpu.memory_space<vmem>>, %arg5: memref<1x128xf32, #tpu.memory_space<vmem>>, %arg6: memref<128x128xbf16, #tpu.memory_space<vmem>>, %arg7: memref<8x128xf32, #tpu.memory_space<vmem>>) attributes {dimension_semantics = [#tpu.dimension_semantics<parallel>], iteration_bounds = array<i64: 1>, scalar_prefetch = 0 : i64, scratch_operands = 0 : i64, tpu.core_type = #tpu.core_type<tc>, window_params = [{transform_indices = @transform_0, window_bounds = array<i64: 8, 32>}, {pipeline_mode = #tpu.pipeline_mode<synchronous>, transform_indices = @transform_1, window_bounds = array<i64: 32, 128>}, {pipeline_mode = #tpu.pipeline_mode<synchronous>, transform_indices = @transform_2, window_bounds = array<i64: 1, 128>}, {pipeline_mode = #tpu.pipeline_mode<synchronous>, transform_indices = @transform_3, window_bounds = array<i64: 128, 128>}, {pipeline_mode = #tpu.pipeline_mode<synchronous>, transform_indices = @transform_4, window_bounds = array<i64: 1, 128>}, {pipeline_mode = #tpu.pipeline_mode<synchronous>, transform_indices = @transform_5, window_bounds = array<i64: 128, 128>}, {transform_indices = @transform_6, window_bounds = array<i64: 8, 128>}]} {
    %c0 = arith.constant 0 : index
    %c0_0 = arith.constant 0 : index
    %0 = vector.load %arg1[%c0, %c0_0] : memref<8x32xf32, #tpu.memory_space<vmem>>, vector<8x32xf32>
    %1 = arith.truncf %0 : vector<8x32xf32> to vector<8x32xbf16>
    %c0_1 = arith.constant 0 : index
    %c0_2 = arith.constant 0 : index
    %2 = vector.load %arg2[%c0_1, %c0_2] : memref<32x128xbf16, #tpu.memory_space<vmem>>, vector<32x128xbf16>
    %cst = arith.constant dense<0.000000e+00> : vector<8x128xf32>
    %3 = tpu.matmul %1, %2, %cst {dimension_numbers = #tpu.dot_dimension_numbers<[1], [0], [0], [1], [0, 0, 1, 1], [], []>} : vector<8x32xbf16>, vector<32x128xbf16>, vector<8x128xf32> -> vector<8x128xf32>
    %c0_3 = arith.constant 0 : index
    %c0_4 = arith.constant 0 : index
    %4 = vector.load %arg3[%c0_3, %c0_4] : memref<1x128xf32, #tpu.memory_space<vmem>>, vector<1x128xf32>
    %5 = vector.broadcast %4 : vector<1x128xf32> to vector<8x128xf32>
    %6 = arith.addf %3, %5 : vector<8x128xf32>
    %cst_5 = arith.constant 0.000000e+00 : f32
    %7 = vector.broadcast %cst_5 : f32 to vector<8x128xf32>
    %8 = arith.maximumf %6, %7 : vector<8x128xf32>
    %9 = arith.truncf %8 : vector<8x128xf32> to vector<8x128xbf16>
    %c0_6 = arith.constant 0 : index
    %c0_7 = arith.constant 0 : index
    %10 = vector.load %arg4[%c0_6, %c0_7] : memref<128x128xbf16, #tpu.memory_space<vmem>>, vector<128x128xbf16>
    %cst_8 = arith.constant dense<0.000000e+00> : vector<8x128xf32>
    %11 = tpu.matmul %9, %10, %cst_8 {dimension_numbers = #tpu.dot_dimension_numbers<[1], [0], [0], [1], [0, 0, 1, 1], [], []>} : vector<8x128xbf16>, vector<128x128xbf16>, vector<8x128xf32> -> vector<8x128xf32>
    %c0_9 = arith.constant 0 : index
    %c0_10 = arith.constant 0 : index
    %12 = vector.load %arg5[%c0_9, %c0_10] : memref<1x128xf32, #tpu.memory_space<vmem>>, vector<1x128xf32>
    %13 = vector.broadcast %12 : vector<1x128xf32> to vector<8x128xf32>
    %14 = arith.addf %11, %13 : vector<8x128xf32>
    %cst_11 = arith.constant 0.000000e+00 : f32
    %15 = vector.broadcast %cst_11 : f32 to vector<8x128xf32>
    %16 = arith.maximumf %14, %15 : vector<8x128xf32>
    %17 = arith.truncf %16 : vector<8x128xf32> to vector<8x128xbf16>
    %c0_12 = arith.constant 0 : index
    %c0_13 = arith.constant 0 : index
    %18 = vector.load %arg6[%c0_12, %c0_13] : memref<128x128xbf16, #tpu.memory_space<vmem>>, vector<128x128xbf16>
    %cst_14 = arith.constant dense<0.000000e+00> : vector<8x128xf32>
    %19 = tpu.matmul %17, %18, %cst_14 {dimension_numbers = #tpu.dot_dimension_numbers<[1], [0], [0], [1], [0, 0, 1, 1], [], []>} : vector<8x128xbf16>, vector<128x128xbf16>, vector<8x128xf32> -> vector<8x128xf32>
    %c0_15 = arith.constant 0 : index
    %c0_16 = arith.constant 0 : index
    %20 = vector.load %arg7[%c0_15, %c0_16] : memref<8x128xf32, #tpu.memory_space<vmem>>, vector<8x128xf32>
    tpu.vector_store %arg7[%c0_15, %c0_16], %19 {strides = array<i32>} : memref<8x128xf32, #tpu.memory_space<vmem>>, vector<8x128xf32>,
    return
  }
  func.func @transform_0(%arg0: i32) -> (i32, i32) {
    %c0_i32 = arith.constant 0 : i32
    %c0_i32_0 = arith.constant 0 : i32
    return %arg0, %c0_i32 : i32, i32
  }
  func.func @transform_1(%arg0: i32) -> (i32, i32) {
    %c0_i32 = arith.constant 0 : i32
    %c0_i32_0 = arith.constant 0 : i32
    %c0_i32_1 = arith.constant 0 : i32
    return %c0_i32, %c0_i32_0 : i32, i32
  }
  func.func @transform_2(%arg0: i32) -> (i32, i32) {
    %c0_i32 = arith.constant 0 : i32
    %c0_i32_0 = arith.constant 0 : i32
    %c0_i32_1 = arith.constant 0 : i32
    return %c0_i32, %c0_i32_0 : i32, i32
  }
  func.func @transform_3(%arg0: i32) -> (i32, i32) {
    %c0_i32 = arith.constant 0 : i32
    %c0_i32_0 = arith.constant 0 : i32
    %c0_i32_1 = arith.constant 0 : i32
    return %c0_i32, %c0_i32_0 : i32, i32
  }
  func.func @transform_4(%arg0: i32) -> (i32, i32) {
    %c0_i32 = arith.constant 0 : i32
    %c0_i32_0 = arith.constant 0 : i32
    %c0_i32_1 = arith.constant 0 : i32
    return %c0_i32, %c0_i32_0 : i32, i32
  }
  func.func @transform_5(%arg0: i32) -> (i32, i32) {
    %c0_i32 = arith.constant 0 : i32
    %c0_i32_0 = arith.constant 0 : i32
    %c0_i32_1 = arith.constant 0 : i32
    return %c0_i32, %c0_i32_0 : i32, i32
  }
  func.func @transform_6(%arg0: i32) -> (i32, i32) {
    %c0_i32 = arith.constant 0 : i32
    %c0_i32_0 = arith.constant 0 : i32
    return %arg0, %c0_i32 : i32, i32
  }
}

module attributes {stable_mosaic.version = 11 : i64} {
  func.func @kernel(%arg0: i32, %arg1: memref<8x32xf32, #tpu.memory_space<vmem>>, %arg2: memref<32x128xbf16, #tpu.memory_space<vmem>>, %arg3: memref<1x128xf32, #tpu.memory_space<vmem>>, %arg4: memref<128x128xbf16, #tpu.memory_space<vmem>>, %arg5: memref<1x128xf32, #tpu.memory_space<vmem>>, %arg6: memref<128x128xbf16, #tpu.memory_space<vmem>>, %arg7: memref<8x128xf32, #tpu.memory_space<vmem>>) attributes {dimension_semantics = [#tpu.dimension_semantics<parallel>], iteration_bounds = array<i64: 1>, scalar_prefetch = 0 : i64, scratch_operands = 0 : i64, tpu.core_type = #tpu.core_type<tc>, window_params = [{transform_indices = @transform_0, window_bounds = array<i64: 8, 32>}, {pipeline_mode = #tpu.pipeline_mode<synchronous>, transform_indices = @transform_1, window_bounds = array<i64: 32, 128>}, {pipeline_mode = #tpu.pipeline_mode<synchronous>, transform_indices = @transform_2, window_bounds = array<i64: 1, 128>}, {pipeline_mode = #tpu.pipeline_mode<synchronous>, transform_indices = @transform_3, window_bounds = array<i64: 128, 128>}, {pipeline_mode = #tpu.pipeline_mode<synchronous>, transform_indices = @transform_4, window_bounds = array<i64: 1, 128>}, {pipeline_mode = #tpu.pipeline_mode<synchronous>, transform_indices = @transform_5, window_bounds = array<i64: 128, 128>}, {transform_indices = @transform_6, window_bounds = array<i64: 8, 128>}]} {
    %c0 = arith.constant 0 : index
    %c0_0 = arith.constant 0 : index
    %0 = vector.load %arg1[%c0, %c0_0] : memref<8x32xf32, #tpu.memory_space<vmem>>, vector<8x32xf32>
    %1 = arith.truncf %0 : vector<8x32xf32> to vector<8x32xbf16>
    %c0_1 = arith.constant 0 : index
    %c0_2 = arith.constant 0 : index
    %2 = vector.load %arg2[%c0_1, %c0_2] : memref<32x128xbf16, #tpu.memory_space<vmem>>, vector<32x128xbf16>
    %cst = arith.constant dense<0.000000e+00> : vector<8x128xf32>
    %3 = tpu.matmul %1, %2, %cst {dimension_numbers = #tpu.dot_dimension_numbers<[1], [0], [0], [1], [0, 0, 1, 1], [], []>} : vector<8x32xbf16>, vector<32x128xbf16>, vector<8x128xf32> -> vector<8x128xf32>
    %c0_3 = arith.constant 0 : index
    %c0_4 = arith.constant 0 : index
    %4 = vector.load %arg3[%c0_3, %c0_4] : memref<1x128xf32, #tpu.memory_space<vmem>>, vector<1x128xf32>
    %5 = vector.broadcast %4 : vector<1x128xf32> to vector<8x128xf32>
    %6 = arith.addf %3, %5 : vector<8x128xf32>
    %cst_5 = arith.constant 0.000000e+00 : f32
    %7 = vector.broadcast %cst_5 : f32 to vector<8x128xf32>
    %8 = arith.maximumf %6, %7 : vector<8x128xf32>
    %9 = arith.truncf %8 : vector<8x128xf32> to vector<8x128xbf16>
    %c0_6 = arith.constant 0 : index
    %c0_7 = arith.constant 0 : index
    %10 = vector.load %arg4[%c0_6, %c0_7] : memref<128x128xbf16, #tpu.memory_space<vmem>>, vector<128x128xbf16>
    %cst_8 = arith.constant dense<0.000000e+00> : vector<8x128xf32>
    %11 = tpu.matmul %9, %10, %cst_8 {dimension_numbers = #tpu.dot_dimension_numbers<[1], [0], [0], [1], [0, 0, 1, 1], [], []>} : vector<8x128xbf16>, vector<128x128xbf16>, vector<8x128xf32> -> vector<8x128xf32>
    %c0_9 = arith.constant 0 : index
    %c0_10 = arith.constant 0 : index
    %12 = vector.load %arg5[%c0_9, %c0_10] : memref<1x128xf32, #tpu.memory_space<vmem>>, vector<1x128xf32>
    %13 = vector.broadcast %12 : vector<1x128xf32> to vector<8x128xf32>
    %14 = arith.addf %11, %13 : vector<8x128xf32>
    %cst_11 = arith.constant 0.000000e+00 : f32
    %15 = vector.broadcast %cst_11 : f32 to vector<8x128xf32>
    %16 = arith.maximumf %14, %15 : vector<8x128xf32>
    %17 = arith.truncf %16 : vector<8x128xf32> to vector<8x128xbf16>
    %c0_12 = arith.constant 0 : index
    %c0_13 = arith.constant 0 : index
    %18 = vector.load %arg6[%c0_12, %c0_13] : memref<128x128xbf16, #tpu.memory_space<vmem>>, vector<128x128xbf16>
    %cst_14 = arith.constant dense<0.000000e+00> : vector<8x128xf32>
    %19 = tpu.matmul %17, %18, %cst_14 {dimension_numbers = #tpu.dot_dimension_numbers<[1], [0], [0], [1], [0, 0, 1, 1], [], []>} : vector<8x128xbf16>, vector<128x128xbf16>, vector<8x128xf32> -> vector<8x128xf32>
    %c0_15 = arith.constant 0 : index
    %c0_16 = arith.constant 0 : index
    %20 = vector.load %arg7[%c0_15, %c0_16] : memref<8x128xf32, #tpu.memory_space<vmem>>, vector<8x128xf32>
    tpu.vector_store %arg7[%c0_15, %c0_16], %19 {strides = array<i32>} : memref<8x128xf32, #tpu.memory_space<vmem>>, vector<8x128xf32>,
    return
  }
  func.func @transform_0(%arg0: i32) -> (i32, i32) {
    %c0_i32 = arith.constant 0 : i32
    %c0_i32_0 = arith.constant 0 : i32
    return %arg0, %c0_i32 : i32, i32
  }
  func.func @transform_1(%arg0: i32) -> (i32, i32) {
    %c0_i32 = arith.constant 0 : i32
    %c0_i32_0 = arith.constant 0 : i32
    %c0_i32_1 = arith.constant 0 : i32
    return %c0_i32, %c0_i32_0 : i32, i32
  }
  func.func @transform_2(%arg0: i32) -> (i32, i32) {
    %c0_i32 = arith.constant 0 : i32
    %c0_i32_0 = arith.constant 0 : i32
    %c0_i32_1 = arith.constant 0 : i32
    return %c0_i32, %c0_i32_0 : i32, i32
  }
  func.func @transform_3(%arg0: i32) -> (i32, i32) {
    %c0_i32 = arith.constant 0 : i32
    %c0_i32_0 = arith.constant 0 : i32
    %c0_i32_1 = arith.constant 0 : i32
    return %c0_i32, %c0_i32_0 : i32, i32
  }
  func.func @transform_4(%arg0: i32) -> (i32, i32) {
    %c0_i32 = arith.constant 0 : i32
    %c0_i32_0 = arith.constant 0 : i32
    %c0_i32_1 = arith.constant 0 : i32
    return %c0_i32, %c0_i32_0 : i32, i32
  }
  func.func @transform_5(%arg0: i32) -> (i32, i32) {
    %c0_i32 = arith.constant 0 : i32
    %c0_i32_0 = arith.constant 0 : i32
    %c0_i32_1 = arith.constant 0 : i32
    return %c0_i32, %c0_i32_0 : i32, i32
  }
  func.func @transform_6(%arg0: i32) -> (i32, i32) {
    %c0_i32 = arith.constant 0 : i32
    %c0_i32_0 = arith.constant 0 : i32
    return %arg0, %c0_i32 : i32, i32
  }
}

</mosaic_0001>

<bundles_post_ra>
// kernel: tpu_custom_call.1
= control target key start
LH: loop header
LB: loop body
LE: loop exit
PB: predicated region body
PF: predicated region fallthrough
CT: control target
= control target key end

     0   :  { %11 = vsyncpa [#allocation3], 0  ;;  %s707_s0 = inlined_call_operand.hbm [shape: f32[8,32], index: 0, kind: input, shape index: {}]   ;;  %s708_s1 = inlined_call_operand.hbm [shape: bf16[32,128], index: 1, kind: input, shape index: {}]   ;;  %s709_s2 = inlined_call_operand.vmem [shape: f32[1,128], index: 2, kind: input, shape index: {}]   ;;  %s710_s3 = inlined_call_operand.hbm [shape: bf16[128,128], index: 3, kind: input, shape index: {}]   ;;  %s711_s4 = inlined_call_operand.vmem [shape: f32[1,128], index: 4, kind: input, shape index: {}]   ;;  %s712_s5 = inlined_call_operand.hbm [shape: bf16[128,128], index: 5, kind: input, shape index: {}]   ;;  %s713_s6 = inlined_call_operand.hbm [shape: f32[8,128], index: 6, kind: output, shape index: {}]  }
   0x1   :  { %12 = vsyncpa [#allocation6], 0 }
   0x2   :  { %13 = vsyncpa [#allocation9], 0 }
   0x3   :  { %14 = vsyncpa [#allocation4], 0  ;;  %s609_s21 = smov [#allocation5]  }
   0x4   :  { %s30_s22 = sshll.u32 %s609_s21, 4  ;;  %s31_s22 = int_to_ptr.vmem [resolvable:$true] %s30_s22 }
   0x5   :  { %s509_s23 = scalar_lea.vmem %s31_s22, 256  ;;  %p514_p1 = scmp.lt.s32.totalorder %s31_s22, %s31_s22 }
   0x6   :  { %p510_p0 = scmp.ne.s32.totalorder %s31_s22, %s509_s23  ;;  %p515_p2 = scmp.lt.s32.totalorder %s509_s23, %s509_s23 }
   0x8   :  { %p516_p3 = por %p515_p2, %p514_p1 }
   0xa   :  { %p517_p4 = pnand %p516_p3, %p510_p0 }
   0xc   :  { %520 = shalt.err (!%p517_p4)
}
   0xd   :  { %s610_s24 = smov 64   ;;  %s611_s25 = smov 4  }
   0xe   :  { %36 = dma.hbm_to_vmem [thread:$0]  %s708_s1, 256, %s31_s22, [#allocation6], %s610_s24, %s610_s24, %s611_s25  }
   0xf   :  { %s612_s28 = smov [#allocation2]   ;;  %s613_s30 = smov [#allocation7]  }
  0x10   :  { %s21_s29 = sshll.u32 %s612_s28, 4  ;;  %s44_s7 = sshll.u32 %s613_s30, 4  ;;  %s22_s29 = int_to_ptr.vmem [resolvable:$true] %s21_s29  ;;  %s45_s7 = int_to_ptr.vmem [resolvable:$true] %s44_s7 }
  0x11   :  { %s529_s8 = scalar_lea.vmem %s22_s29, 128  ;;  %p534_p6 = scmp.lt.s32.totalorder %s22_s29, %s22_s29 }
  0x12   :  { %p530_p5 = scmp.ne.s32.totalorder %s22_s29, %s529_s8  ;;  %p535_p7 = scmp.lt.s32.totalorder %s529_s8, %s529_s8 }
  0x14   :  { %p536_p8 = por %p535_p7, %p534_p6 }
  0x16   :  { %p537_p9 = pnand %p536_p8, %p530_p5 }
  0x18   :  { %540 = shalt.err (!%p537_p9)
}
  0x19   :  { %24 = dma.hbm_to_vmem [thread:$0]  %s707_s0, 128, %s22_s29, [#allocation3]  }
  0x1a   :  { %s549_s11 = scalar_lea.vmem %s45_s7, 1024  ;;  %p554_p11 = scmp.lt.s32.totalorder %s45_s7, %s45_s7 }
  0x1b   :  { %p550_p10 = scmp.ne.s32.totalorder %s45_s7, %s549_s11  ;;  %p555_p12 = scmp.lt.s32.totalorder %s549_s11, %s549_s11 }
  0x1d   :  { %p556_p13 = por %p555_p12, %p554_p11 }
  0x1f   :  { %p557_p0 = pnand %p556_p13, %p550_p10 }
  0x21   :  { %560 = shalt.err (!%p557_p0)
}
  0x22   :  { %50 = dma.hbm_to_vmem [thread:$0]  %s710_s3, 1024, %s45_s7, [#allocation6], %s610_s24, %s610_s24, %s611_s25  }
  0x23   :  { %s614_s13 = smov [#allocation8]  }
  0x24   :  { %s58_s14 = sshll.u32 %s614_s13, 4  ;;  %s59_s14 = int_to_ptr.vmem [resolvable:$true] %s58_s14 }
  0x25   :  { %s569_s15 = scalar_lea.vmem %s59_s14, 1024  ;;  %p574_p2 = scmp.lt.s32.totalorder %s59_s14, %s59_s14 }
  0x26   :  { %p570_p1 = scmp.ne.s32.totalorder %s59_s14, %s569_s15  ;;  %p575_p3 = scmp.lt.s32.totalorder %s569_s15, %s569_s15 }
  0x28   :  { %p576_p4 = por %p575_p3, %p574_p2 }
  0x2a   :  { %p577_p5 = pnand %p576_p4, %p570_p1 }
  0x2c   :  { %580 = shalt.err (!%p577_p5)
}
  0x2d   :  { %64 = dma.hbm_to_vmem [thread:$0]  %s712_s5, 1024, %s59_s14, [#allocation9], %s610_s24, %s610_s24, %s611_s25  }
  0x2e   :  { %601 = dma.done.wait [#allocation3], 128  }
  0x2f   :  { %602 = vsyncadd [#allocation3], 4294967168 }
  0x30   :  { %603 = dma.done.wait [#allocation6], 1280  }
  0x31   :  { %604 = vsyncadd [#allocation6], 4294966016 }
  0x32   :  { %605 = dma.done.wait [#allocation9], 1024  }
  0x33   :  { %606 = vsyncadd [#allocation9], 4294966272  ;;  %v615_v0 = vmov 0.0   ;;  %vm616_vm0 = vmmov 0   ;;  %v483_v1 = vld [vmem:[#allocation5 + $0x8] sm:$0xff]   ;;  %v484_v2 = vld [vmem:[#allocation5] sm:$0xff]  }
  0x34   :  { %426 = vmatprep.subr.bf16.mxu0 %v615_v0  ;;  %430 = vmatprep.mubr.msk.bf16.mxu0 %vm616_vm0, %v615_v0  ;;  %v78_v3 = vld [vmem:[#allocation2] sm:$0xff]  ;;  %v485_v4 = vld [vmem:[#allocation7 + $0x38] sm:$0xff]   ;;  %v486_v6 = vld [vmem:[#allocation7 + $0x30] sm:$0xff]   ;;  %vm103_vm1 = vcmask 261120  }
  0x35   :  { %434 = vmatprep.subr.bf16.mxu1 %v615_v0  ;;  %450 = vmatprep.mubr.msk.bf16.mxu1 %vm616_vm0, %v615_v0  ;;  %v79_v5 = vpack.c.bf16 %v78_v3, %v78_v3  ;;  %v487_v7 = vld [vmem:[#allocation7 + $0x28] sm:$0xff]   ;;  %v488_v8 = vld [vmem:[#allocation7 + $0x20] sm:$0xff]   ;;  %v489_v9 = vld [vmem:[#allocation7 + $0x18] sm:$0xff]  }
  0x36   :  { %427 = vmatpush3.bf16.msra.mxu0 %v483_v1  ;;  %435 = vmatpush3.bf16.msra.mxu1 %v485_v4  ;;  %v490_v10 = vld [vmem:[#allocation7 + $0x10] sm:$0xff]   ;;  %v491_v11 = vld [vmem:[#allocation7 + $0x8] sm:$0xff]   ;;  %v492_v12 = vld [vmem:[#allocation7] sm:$0xff]  }
  0x37   :  { %428 = vmatprep.subr.bf16.mxu0 %v615_v0  ;;  %436 = vmatprep.subr.bf16.mxu1 %v615_v0  ;;  %v493_v13 = vld [vmem:[#allocation8 + $0x38] sm:$0xff]   ;;  %v494_v14 = vld [vmem:[#allocation8 + $0x30] sm:$0xff]   ;;  %v495_v15 = vld [vmem:[#allocation8 + $0x28] sm:$0xff]  }
  0x38   :  { %v496_v16 = vld [vmem:[#allocation8 + $0x20] sm:$0xff]   ;;  %v497_v17 = vld [vmem:[#allocation8 + $0x18] sm:$0xff]   ;;  %v498_v18 = vld [vmem:[#allocation8 + $0x10] sm:$0xff]  }
  0x39   :  { %v384_v19 = vld [vmem:[%s709_s2] ss:$0 sm:$0xff]  ;;  %v500_v28 = vld [vmem:[#allocation8] sm:$0xff]   ;;  %s617_s2 = smov [#allocation10]  }
  0x3a   :  { %429 = vmatpush3.bf16.msra.mxu0 %v484_v2  ;;  %437 = vmatpush3.bf16.msra.mxu1 %v486_v6  ;;  %v499_v27 = vld [vmem:[#allocation8 + $0x8] sm:$0xff]   ;;  %s373_s19 = sshll.u32 %s617_s2, 4  ;;  %s374_s19 = int_to_ptr.vmem [resolvable:$true] %s373_s19 }
  0x3b   :  { %454 = vmatprep.subr.bf16.mxu0 %v615_v0  ;;  %438 = vmatprep.subr.bf16.mxu1 %v615_v0  ;;  %v388_v29 = vld [vmem:[%s711_s4] ss:$0 sm:$0xff]  ;;  %s581_s20 = scalar_lea.vmem %s374_s19, 128  ;;  %p586_p7 = scmp.lt.s32.totalorder %s374_s19, %s374_s19 }
  0x3c   :  { %p582_p6 = scmp.ne.s32.totalorder %s374_s19, %s581_s20  ;;  %p587_p8 = scmp.lt.s32.totalorder %s581_s20, %s581_s20 }
  0x3d   :  { %431 = vmatmul.mubr.msk.bf16.vlgmr.msra.gmra.mxu0 %vm103_vm1, %v79_v5 }
  0x3e   :  { %470 = vmatprep.mubr.msk.bf16.mxu0 %vm616_vm0, %v615_v0  ;;  %439 = vmatpush3.bf16.msra.mxu1 %v487_v7  ;;  %p588_p9 = por %p587_p8, %p586_p7 }
  0x3f   :  { %440 = vmatprep.subr.bf16.mxu1 %v615_v0  ;;  %455 = vmatpush3.bf16.msra.mxu0 %v493_v13 }
  0x40   :  { %456 = vmatprep.subr.bf16.mxu0 %v615_v0  ;;  %p589_p10 = pnand %p588_p9, %p582_p6 }
  0x42   :  { %441 = vmatpush3.bf16.msra.mxu1 %v488_v8 }
  0x43   :  { %442 = vmatprep.subr.bf16.mxu1 %v615_v0  ;;  %457 = vmatpush3.bf16.msra.mxu0 %v494_v14 }
  0x44   :  { %458 = vmatprep.subr.bf16.mxu0 %v615_v0 }
  0x46   :  { %443 = vmatpush3.bf16.msra.mxu1 %v489_v9 }
  0x47   :  { %444 = vmatprep.subr.bf16.mxu1 %v615_v0  ;;  %459 = vmatpush3.bf16.msra.mxu0 %v495_v15 }
  0x48   :  { %460 = vmatprep.subr.bf16.mxu0 %v615_v0 }
  0x4a   :  { %445 = vmatpush3.bf16.msra.mxu1 %v490_v10 }
  0x4b   :  { %446 = vmatprep.subr.bf16.mxu1 %v615_v0  ;;  %461 = vmatpush3.bf16.msra.mxu0 %v496_v16 }
  0x4c   :  { %462 = vmatprep.subr.bf16.mxu0 %v615_v0 }
  0x4e   :  { %447 = vmatpush3.bf16.msra.mxu1 %v491_v11 }
  0x4f   :  { %448 = vmatprep.subr.bf16.mxu1 %v615_v0  ;;  %463 = vmatpush3.bf16.msra.mxu0 %v497_v17 }
  0x50   :  { %464 = vmatprep.subr.bf16.mxu0 %v615_v0 }
  0x52   :  { %449 = vmatpush3.bf16.msra.mxu1 %v492_v12 }
  0x53   :  { %465 = vmatpush3.bf16.msra.mxu0 %v498_v18 }
  0x54   :  { %466 = vmatprep.subr.bf16.mxu0 %v615_v0 }
  0x57   :  { %467 = vmatpush3.bf16.msra.mxu0 %v499_v27 }
  0x58   :  { %468 = vmatprep.subr.bf16.mxu0 %v615_v0 }
  0x5b   :  { %469 = vmatpush3.bf16.msra.mxu0 %v500_v28 }
  0xfd   :  { %v141_v20 = vpop.f32.mrf.mxu0 }
  0xfe   :  { %v142_v21 = vadd.f32 %v384_v19, %v141_v20 }
  0xff   :  { %v432_v22 = vpop.f32.mrf.mxu0 }
 0x100   :  { %v147_v23 = vmax.f32 %v142_v21, 0.0 }
 0x101   :  { %v144_v24 = vpop.f32.mrf.mxu0 }
 0x102   :  { %v148_v25 = vpack.c.bf16 %v147_v23, %v147_v23 }
 0x103   :  { %v433_v26 = vpop.f32.mrf.mxu0 }
 0x104   :  { %451 = vmatmul.mubr.bf16.vlgmr.msra.gmra.mxu1 %v148_v25 }
 0x1c4   :  { %v254_v30 = vpop.f32.mrf.mxu1 }
 0x1c5   :  { %v255_v31 = vadd.f32 %v388_v29, %v254_v30 }
 0x1c6   :  { %v452_v32 = vpop.f32.mrf.mxu1 }
 0x1c7   :  { %v260_v33 = vmax.f32 %v255_v31, 0.0 }
 0x1c8   :  { %v257_v34 = vpop.f32.mrf.mxu1 }
 0x1c9   :  { %v261_v35 = vpack.c.bf16 %v260_v33, %v260_v33 }
 0x1ca   :  { %v453_v36 = vpop.f32.mrf.mxu1 }
 0x1cb   :  { %471 = vmatmul.mubr.bf16.vlgmr.msra.gmra.mxu0 %v261_v35 }
 0x28b   :  { %v360_v37 = vpop.f32.mrf.mxu0 }
 0x28c   :  { %366 = vst [vmem:[#allocation10] sm:$0xff] %v360_v37 }
 0x28d   :  { %v472_v38 = vpop.f32.mrf.mxu0 }
 0x28e   :  { %592 = shalt.err (!%p589_p10)
}
 0x28f   :  { %376 = dma.vmem_to_hbm [thread:$0]  %s374_s19, 128, %s713_s6, [#allocation4]   ;;  %v363_v39 = vpop.f32.mrf.mxu0 }
 0x291   :  { %v473_v40 = vpop.f32.mrf.mxu0 }
 0x292   :  { %607 = dma.done.wait [#allocation4], 128  }
 0x293   :  { %608 = vsyncadd [#allocation4], 4294967168 }
 0x294   :  { %380 = vsyncpa [#allocation3], 1 }
 0x295   :  { %381 = vsyncpa [#allocation6], 1 }
 0x296   :  { %382 = vsyncpa [#allocation9], 1 }
 0x297   :  { %383 = vsyncpa [#allocation4], 1 }

// kernel: tpu_custom_call.1
= control target key start
LH: loop header
LB: loop body
LE: loop exit
PB: predicated region body
PF: predicated region fallthrough
CT: control target
= control target key end

     0   :  { %11 = vsyncpa [#allocation3], 0  ;;  %s707_s0 = inlined_call_operand.hbm [shape: f32[8,32], index: 0, kind: input, shape index: {}]   ;;  %s708_s1 = inlined_call_operand.hbm [shape: bf16[32,128], index: 1, kind: input, shape index: {}]   ;;  %s709_s2 = inlined_call_operand.vmem [shape: f32[1,128], index: 2, kind: input, shape index: {}]   ;;  %s710_s3 = inlined_call_operand.hbm [shape: bf16[128,128], index: 3, kind: input, shape index: {}]   ;;  %s711_s4 = inlined_call_operand.vmem [shape: f32[1,128], index: 4, kind: input, shape index: {}]   ;;  %s712_s5 = inlined_call_operand.hbm [shape: bf16[128,128], index: 5, kind: input, shape index: {}]   ;;  %s713_s6 = inlined_call_operand.hbm [shape: f32[8,128], index: 6, kind: output, shape index: {}]  }
   0x1   :  { %12 = vsyncpa [#allocation6], 0 }
   0x2   :  { %13 = vsyncpa [#allocation9], 0 }
   0x3   :  { %14 = vsyncpa [#allocation4], 0  ;;  %s609_s21 = smov [#allocation5]  }
   0x4   :  { %s30_s22 = sshll.u32 %s609_s21, 4  ;;  %s31_s22 = int_to_ptr.vmem [resolvable:$true] %s30_s22 }
   0x5   :  { %s509_s23 = scalar_lea.vmem %s31_s22, 256  ;;  %p514_p1 = scmp.lt.s32.totalorder %s31_s22, %s31_s22 }
   0x6   :  { %p510_p0 = scmp.ne.s32.totalorder %s31_s22, %s509_s23  ;;  %p515_p2 = scmp.lt.s32.totalorder %s509_s23, %s509_s23 }
   0x8   :  { %p516_p3 = por %p515_p2, %p514_p1 }
   0xa   :  { %p517_p4 = pnand %p516_p3, %p510_p0 }
   0xc   :  { %520 = shalt.err (!%p517_p4)
}
   0xd   :  { %s610_s24 = smov 64   ;;  %s611_s25 = smov 4  }
   0xe   :  { %36 = dma.hbm_to_vmem [thread:$0]  %s708_s1, 256, %s31_s22, [#allocation6], %s610_s24, %s610_s24, %s611_s25  }
   0xf   :  { %s612_s28 = smov [#allocation2]   ;;  %s613_s30 = smov [#allocation7]  }
  0x10   :  { %s21_s29 = sshll.u32 %s612_s28, 4  ;;  %s44_s7 = sshll.u32 %s613_s30, 4  ;;  %s22_s29 = int_to_ptr.vmem [resolvable:$true] %s21_s29  ;;  %s45_s7 = int_to_ptr.vmem [resolvable:$true] %s44_s7 }
  0x11   :  { %s529_s8 = scalar_lea.vmem %s22_s29, 128  ;;  %p534_p6 = scmp.lt.s32.totalorder %s22_s29, %s22_s29 }
  0x12   :  { %p530_p5 = scmp.ne.s32.totalorder %s22_s29, %s529_s8  ;;  %p535_p7 = scmp.lt.s32.totalorder %s529_s8, %s529_s8 }
  0x14   :  { %p536_p8 = por %p535_p7, %p534_p6 }
  0x16   :  { %p537_p9 = pnand %p536_p8, %p530_p5 }
  0x18   :  { %540 = shalt.err (!%p537_p9)
}
  0x19   :  { %24 = dma.hbm_to_vmem [thread:$0]  %s707_s0, 128, %s22_s29, [#allocation3]  }
  0x1a   :  { %s549_s11 = scalar_lea.vmem %s45_s7, 1024  ;;  %p554_p11 = scmp.lt.s32.totalorder %s45_s7, %s45_s7 }
  0x1b   :  { %p550_p10 = scmp.ne.s32.totalorder %s45_s7, %s549_s11  ;;  %p555_p12 = scmp.lt.s32.totalorder %s549_s11, %s549_s11 }
  0x1d   :  { %p556_p13 = por %p555_p12, %p554_p11 }
  0x1f   :  { %p557_p0 = pnand %p556_p13, %p550_p10 }
  0x21   :  { %560 = shalt.err (!%p557_p0)
}
  0x22   :  { %50 = dma.hbm_to_vmem [thread:$0]  %s710_s3, 1024, %s45_s7, [#allocation6], %s610_s24, %s610_s24, %s611_s25  }
  0x23   :  { %s614_s13 = smov [#allocation8]  }
  0x24   :  { %s58_s14 = sshll.u32 %s614_s13, 4  ;;  %s59_s14 = int_to_ptr.vmem [resolvable:$true] %s58_s14 }
  0x25   :  { %s569_s15 = scalar_lea.vmem %s59_s14, 1024  ;;  %p574_p2 = scmp.lt.s32.totalorder %s59_s14, %s59_s14 }
  0x26   :  { %p570_p1 = scmp.ne.s32.totalorder %s59_s14, %s569_s15  ;;  %p575_p3 = scmp.lt.s32.totalorder %s569_s15, %s569_s15 }
  0x28   :  { %p576_p4 = por %p575_p3, %p574_p2 }
  0x2a   :  { %p577_p5 = pnand %p576_p4, %p570_p1 }
  0x2c   :  { %580 = shalt.err (!%p577_p5)
}
  0x2d   :  { %64 = dma.hbm_to_vmem [thread:$0]  %s712_s5, 1024, %s59_s14, [#allocation9], %s610_s24, %s610_s24, %s611_s25  }
  0x2e   :  { %601 = dma.done.wait [#allocation3], 128  }
  0x2f   :  { %602 = vsyncadd [#allocation3], 4294967168 }
  0x30   :  { %603 = dma.done.wait [#allocation6], 1280  }
  0x31   :  { %604 = vsyncadd [#allocation6], 4294966016 }
  0x32   :  { %605 = dma.done.wait [#allocation9], 1024  }
  0x33   :  { %606 = vsyncadd [#allocation9], 4294966272  ;;  %v615_v0 = vmov 0.0   ;;  %vm616_vm0 = vmmov 0   ;;  %v483_v1 = vld [vmem:[#allocation5 + $0x8] sm:$0xff]   ;;  %v484_v2 = vld [vmem:[#allocation5] sm:$0xff]  }
  0x34   :  { %426 = vmatprep.subr.bf16.mxu0 %v615_v0  ;;  %430 = vmatprep.mubr.msk.bf16.mxu0 %vm616_vm0, %v615_v0  ;;  %v78_v3 = vld [vmem:[#allocation2] sm:$0xff]  ;;  %v485_v4 = vld [vmem:[#allocation7 + $0x38] sm:$0xff]   ;;  %v486_v6 = vld [vmem:[#allocation7 + $0x30] sm:$0xff]   ;;  %vm103_vm1 = vcmask 261120  }
  0x35   :  { %434 = vmatprep.subr.bf16.mxu1 %v615_v0  ;;  %450 = vmatprep.mubr.msk.bf16.mxu1 %vm616_vm0, %v615_v0  ;;  %v79_v5 = vpack.c.bf16 %v78_v3, %v78_v3  ;;  %v487_v7 = vld [vmem:[#allocation7 + $0x28] sm:$0xff]   ;;  %v488_v8 = vld [vmem:[#allocation7 + $0x20] sm:$0xff]   ;;  %v489_v9 = vld [vmem:[#allocation7 + $0x18] sm:$0xff]  }
  0x36   :  { %427 = vmatpush3.bf16.msra.mxu0 %v483_v1  ;;  %435 = vmatpush3.bf16.msra.mxu1 %v485_v4  ;;  %v490_v10 = vld [vmem:[#allocation7 + $0x10] sm:$0xff]   ;;  %v491_v11 = vld [vmem:[#allocation7 + $0x8] sm:$0xff]   ;;  %v492_v12 = vld [vmem:[#allocation7] sm:$0xff]  }
  0x37   :  { %428 = vmatprep.subr.bf16.mxu0 %v615_v0  ;;  %436 = vmatprep.subr.bf16.mxu1 %v615_v0  ;;  %v493_v13 = vld [vmem:[#allocation8 + $0x38] sm:$0xff]   ;;  %v494_v14 = vld [vmem:[#allocation8 + $0x30] sm:$0xff]   ;;  %v495_v15 = vld [vmem:[#allocation8 + $0x28] sm:$0xff]  }
  0x38   :  { %v496_v16 = vld [vmem:[#allocation8 + $0x20] sm:$0xff]   ;;  %v497_v17 = vld [vmem:[#allocation8 + $0x18] sm:$0xff]   ;;  %v498_v18 = vld [vmem:[#allocation8 + $0x10] sm:$0xff]  }
  0x39   :  { %v384_v19 = vld [vmem:[%s709_s2] ss:$0 sm:$0xff]  ;;  %v500_v28 = vld [vmem:[#allocation8] sm:$0xff]   ;;  %s617_s2 = smov [#allocation10]  }
  0x3a   :  { %429 = vmatpush3.bf16.msra.mxu0 %v484_v2  ;;  %437 = vmatpush3.bf16.msra.mxu1 %v486_v6  ;;  %v499_v27 = vld [vmem:[#allocation8 + $0x8] sm:$0xff]   ;;  %s373_s19 = sshll.u32 %s617_s2, 4  ;;  %s374_s19 = int_to_ptr.vmem [resolvable:$true] %s373_s19 }
  0x3b   :  { %454 = vmatprep.subr.bf16.mxu0 %v615_v0  ;;  %438 = vmatprep.subr.bf16.mxu1 %v615_v0  ;;  %v388_v29 = vld [vmem:[%s711_s4] ss:$0 sm:$0xff]  ;;  %s581_s20 = scalar_lea.vmem %s374_s19, 128  ;;  %p586_p7 = scmp.lt.s32.totalorder %s374_s19, %s374_s19 }
  0x3c   :  { %p582_p6 = scmp.ne.s32.totalorder %s374_s19, %s581_s20  ;;  %p587_p8 = scmp.lt.s32.totalorder %s581_s20, %s581_s20 }
  0x3d   :  { %431 = vmatmul.mubr.msk.bf16.vlgmr.msra.gmra.mxu0 %vm103_vm1, %v79_v5 }
  0x3e   :  { %470 = vmatprep.mubr.msk.bf16.mxu0 %vm616_vm0, %v615_v0  ;;  %439 = vmatpush3.bf16.msra.mxu1 %v487_v7  ;;  %p588_p9 = por %p587_p8, %p586_p7 }
  0x3f   :  { %440 = vmatprep.subr.bf16.mxu1 %v615_v0  ;;  %455 = vmatpush3.bf16.msra.mxu0 %v493_v13 }
  0x40   :  { %456 = vmatprep.subr.bf16.mxu0 %v615_v0  ;;  %p589_p10 = pnand %p588_p9, %p582_p6 }
  0x42   :  { %441 = vmatpush3.bf16.msra.mxu1 %v488_v8 }
  0x43   :  { %442 = vmatprep.subr.bf16.mxu1 %v615_v0  ;;  %457 = vmatpush3.bf16.msra.mxu0 %v494_v14 }
  0x44   :  { %458 = vmatprep.subr.bf16.mxu0 %v615_v0 }
  0x46   :  { %443 = vmatpush3.bf16.msra.mxu1 %v489_v9 }
  0x47   :  { %444 = vmatprep.subr.bf16.mxu1 %v615_v0  ;;  %459 = vmatpush3.bf16.msra.mxu0 %v495_v15 }
  0x48   :  { %460 = vmatprep.subr.bf16.mxu0 %v615_v0 }
  0x4a   :  { %445 = vmatpush3.bf16.msra.mxu1 %v490_v10 }
  0x4b   :  { %446 = vmatprep.subr.bf16.mxu1 %v615_v0  ;;  %461 = vmatpush3.bf16.msra.mxu0 %v496_v16 }
  0x4c   :  { %462 = vmatprep.subr.bf16.mxu0 %v615_v0 }
  0x4e   :  { %447 = vmatpush3.bf16.msra.mxu1 %v491_v11 }
  0x4f   :  { %448 = vmatprep.subr.bf16.mxu1 %v615_v0  ;;  %463 = vmatpush3.bf16.msra.mxu0 %v497_v17 }
  0x50   :  { %464 = vmatprep.subr.bf16.mxu0 %v615_v0 }
  0x52   :  { %449 = vmatpush3.bf16.msra.mxu1 %v492_v12 }
  0x53   :  { %465 = vmatpush3.bf16.msra.mxu0 %v498_v18 }
  0x54   :  { %466 = vmatprep.subr.bf16.mxu0 %v615_v0 }
  0x57   :  { %467 = vmatpush3.bf16.msra.mxu0 %v499_v27 }
  0x58   :  { %468 = vmatprep.subr.bf16.mxu0 %v615_v0 }
  0x5b   :  { %469 = vmatpush3.bf16.msra.mxu0 %v500_v28 }
  0xfd   :  { %v141_v20 = vpop.f32.mrf.mxu0 }
  0xfe   :  { %v142_v21 = vadd.f32 %v384_v19, %v141_v20 }
  0xff   :  { %v432_v22 = vpop.f32.mrf.mxu0 }
 0x100   :  { %v147_v23 = vmax.f32 %v142_v21, 0.0 }
 0x101   :  { %v144_v24 = vpop.f32.mrf.mxu0 }
 0x102   :  { %v148_v25 = vpack.c.bf16 %v147_v23, %v147_v23 }
 0x103   :  { %v433_v26 = vpop.f32.mrf.mxu0 }
 0x104   :  { %451 = vmatmul.mubr.bf16.vlgmr.msra.gmra.mxu1 %v148_v25 }
 0x1c4   :  { %v254_v30 = vpop.f32.mrf.mxu1 }
 0x1c5   :  { %v255_v31 = vadd.f32 %v388_v29, %v254_v30 }
 0x1c6   :  { %v452_v32 = vpop.f32.mrf.mxu1 }
 0x1c7   :  { %v260_v33 = vmax.f32 %v255_v31, 0.0 }
 0x1c8   :  { %v257_v34 = vpop.f32.mrf.mxu1 }
 0x1c9   :  { %v261_v35 = vpack.c.bf16 %v260_v33, %v260_v33 }
 0x1ca   :  { %v453_v36 = vpop.f32.mrf.mxu1 }
 0x1cb   :  { %471 = vmatmul.mubr.bf16.vlgmr.msra.gmra.mxu0 %v261_v35 }
 0x28b   :  { %v360_v37 = vpop.f32.mrf.mxu0 }
 0x28c   :  { %366 = vst [vmem:[#allocation10] sm:$0xff] %v360_v37 }
 0x28d   :  { %v472_v38 = vpop.f32.mrf.mxu0 }
 0x28e   :  { %592 = shalt.err (!%p589_p10)
}
 0x28f   :  { %376 = dma.vmem_to_hbm [thread:$0]  %s374_s19, 128, %s713_s6, [#allocation4]   ;;  %v363_v39 = vpop.f32.mrf.mxu0 }
 0x291   :  { %v473_v40 = vpop.f32.mrf.mxu0 }
 0x292   :  { %607 = dma.done.wait [#allocation4], 128  }
 0x293   :  { %608 = vsyncadd [#allocation4], 4294967168 }
 0x294   :  { %380 = vsyncpa [#allocation3], 1 }
 0x295   :  { %381 = vsyncpa [#allocation6], 1 }
 0x296   :  { %382 = vsyncpa [#allocation9], 1 }
 0x297   :  { %383 = vsyncpa [#allocation4], 1 }

</bundles_post_ra>
